<compile_context>
chip_gen: v7x
topology: tpu7x:2x2x1
jax: 0.10.0
libtpu: 0.0.40
codegen_flags: <defaults>
</compile_context>

<pallas_src>
import functools

import jax
import jax.numpy as jnp
from jax import lax
from jax.experimental import pallas as pl
from jax.experimental.pallas import tpu as pltpu


# ----------------------------- tiling helpers ------------------------------

def _largest_row_block(p, cap):
    """Largest divisor of p that is <= cap and a multiple of 8 (or p itself)."""
    for d in range(min(p, cap), 0, -1):
        if p % d == 0 and (d % 8 == 0 or d == p):
            return d
    return p


def _pick_batch_block(bf, cap=32):
    """Largest multiple-of-8 divisor of bf that still leaves >= 2 grid steps."""
    best = None
    for d in range(8, min(cap, bf // 2) + 1, 8):
        if bf % d == 0:
            best = d
    return best if best is not None else bf


# ----------------------------- Pallas kernels ------------------------------

def _linear_kernel(x_ref, w_ref, b_ref, o_ref):
    # x: [tm, Cin], w: [Cin, Cout], b: [1, Cout] -> o: [tm, Cout]
    o_ref[...] = (
        jnp.dot(x_ref[...], w_ref[...], preferred_element_type=jnp.float32)
        + b_ref[...]
    ).astype(o_ref.dtype)


def linear_1x1(x_flat, w, b, *, tm_cap=1024):
    p, cin = x_flat.shape
    cout = w.shape[1]
    tm = _largest_row_block(p, tm_cap)
    return pl.pallas_call(
        _linear_kernel,
        out_shape=jax.ShapeDtypeStruct((p, cout), jnp.float32),
        grid=(p // tm,),
        in_specs=[
            pl.BlockSpec((tm, cin), lambda i: (i, 0)),
            pl.BlockSpec((cin, cout), lambda i: (0, 0)),
            pl.BlockSpec((1, cout), lambda i: (0, 0)),
        ],
        out_specs=pl.BlockSpec((tm, cout), lambda i: (i, 0)),
        compiler_params=pltpu.CompilerParams(
            dimension_semantics=("parallel",)),
    )(x_flat, w, b.reshape(1, -1))


def _make_cluster_kernel(w, h, pw, ph, C):
    """Cluster core for a batch of folded entries.

    Blocks are lane-dense 2-D slabs (Bblk, N*C); the (Bblk, N, C) view is
    created inside the kernel.  alpha/beta are SMEM scalars.
    """
    N = w * h
    M = pw * ph
    bw, bh = w // pw, h // ph

    def kernel(x_ref, v_ref, alpha_ref, beta_ref, o_ref):
        bblk = x_ref.shape[0]
        alpha = alpha_ref[0]
        beta = beta_ref[0]

        x = x_ref[...].reshape(bblk, N, C)      # [Bblk, N, C]
        v = v_ref[...].reshape(bblk, N, C)      # [Bblk, N, C]

        # Adaptive average pool == tiny pooling matrix (rows average one block),
        # built from iota so no extra input stream is needed.
        n_iota = lax.broadcasted_iota(jnp.int32, (M, N), 1)
        m_iota = lax.broadcasted_iota(jnp.int32, (M, N), 0)
        wi = n_iota // h
        hi = n_iota - wi * h
        blk = (wi // bw) * ph + hi // bh
        pool = jnp.where(m_iota == blk, 1.0 / float(bw * bh), 0.0)
        pool = pool.astype(jnp.float32)
        pool_b = jnp.broadcast_to(pool[None], (bblk, M, N))

        centers = jnp.einsum("bmn,bnc->bmc", pool_b, x,
                             preferred_element_type=jnp.float32)   # [Bblk, M, C]
        v_centers = jnp.einsum("bmn,bnc->bmc", pool_b, v,
                               preferred_element_type=jnp.float32)  # [Bblk, M, C]

        def l2norm(t):
            nrm = jnp.sqrt(jnp.sum(t * t, axis=-1, keepdims=True))
            return t / jnp.maximum(nrm, 1e-12)

        cos = jnp.einsum("bmc,bnc->bmn", l2norm(centers), l2norm(x),
                         preferred_element_type=jnp.float32)        # [Bblk, M, N]
        sim = jax.nn.sigmoid(beta + alpha * cos)

        # hard assignment: keep only each point's first argmax center
        col_max = jnp.max(sim, axis=1, keepdims=True)               # [Bblk, 1, N]
        m3 = lax.broadcasted_iota(jnp.int32, sim.shape, 1)
        first_idx = jnp.min(jnp.where(sim >= col_max, m3, M),
                            axis=1, keepdims=True)                  # [Bblk, 1, N]
        mask = (m3 == first_idx).astype(sim.dtype)                  # [Bblk, M, N]
        sim_m = sim * mask

        counts = jnp.sum(mask, axis=-1, keepdims=True)              # [Bblk, M, 1]
        agg = (jnp.einsum("bmn,bnc->bmc", sim_m, v,
                          preferred_element_type=jnp.float32)
               + v_centers) / (counts + 1.0)                        # [Bblk, M, C]
        out = jnp.einsum("bmn,bmc->bnc", sim_m, agg,
                         preferred_element_type=jnp.float32)        # [Bblk, N, C]

        o_ref[...] = out.reshape(bblk, N * C).astype(o_ref.dtype)

    return kernel


# ------------------------------- glue (JAX) --------------------------------

def cluster_forward(x, params, *, heads, head_dim, fold_w, fold_h,
                    prop_w, prop_h):
    B, dim, W0, H0 = x.shape
    C = head_dim
    hd = heads * C
    w, h = W0 // fold_w, H0 // fold_h
    N, M = w * h, prop_w * prop_h
    NC = N * C
    Bf = B * heads * fold_w * fold_h
    P = B * W0 * H0

    # ---- fused f|v 1x1 conv (point-major matmul) ----
    x_flat = jnp.transpose(x, (0, 2, 3, 1)).reshape(P, dim)
    wfv = jnp.concatenate([params["f_w"], params["v_w"]], axis=1)   # [dim, 2*hd]
    bfv = jnp.concatenate([params["f_b"], params["v_b"]], axis=0)   # [2*hd]
    fused = linear_1x1(x_flat, wfv, bfv)                            # [P, 2*hd]

    # ---- fold / split heads (layout plumbing outside the kernel) ----
    t = fused.reshape(B, fold_w, w, fold_h, h, 2, heads, C)
    t = jnp.transpose(t, (5, 0, 6, 1, 3, 2, 4, 7))   # (2, B, e, f1, f2, w, h, C)
    t = t.reshape(2, Bf, NC)
    xh2, vh2 = t[0], t[1]                            # lane-dense (Bf, N*C)

    # ---- clustering core ----
    bblk = _pick_batch_block(Bf)
    cluster_kernel = _make_cluster_kernel(w, h, prop_w, prop_h, C)
    out2d = pl.pallas_call(
        cluster_kernel,
        out_shape=jax.ShapeDtypeStruct((Bf, NC), jnp.float32),
        grid=(Bf // bblk,),
        in_specs=[
            pl.BlockSpec((bblk, NC), lambda i: (i, 0)),
            pl.BlockSpec((bblk, NC), lambda i: (i, 0)),
            pl.BlockSpec(memory_space=pltpu.MemorySpace.SMEM),
            pl.BlockSpec(memory_space=pltpu.MemorySpace.SMEM),
        ],
        out_specs=pl.BlockSpec((bblk, NC), lambda i: (i, 0)),
        compiler_params=pltpu.CompilerParams(
            dimension_semantics=("parallel",)),
    )(xh2, vh2, params["sim_alpha"], params["sim_beta"])

    # ---- un-fold / merge heads -> [P, heads*C] ----
    t = out2d.reshape(B, heads, fold_w, fold_h, w, h, C)
    t = jnp.transpose(t, (0, 2, 4, 3, 5, 1, 6))      # (B, f1, w, f2, h, e, C)
    t = t.reshape(P, hd)

    # ---- proj 1x1 conv ----
    out = linear_1x1(t, params["p_w"], params["p_b"])
    out_dim = params["p_w"].shape[1]
    out = out.reshape(B, W0, H0, out_dim)
    return jnp.transpose(out, (0, 3, 1, 2))          # NCHW


# ------------------------ pure-JAX reference (checks) -----------------------

def _conv1x1_ref(t, w, b):  # t NCHW, w [Cin, Cout]
    return jnp.einsum("bchw,co->bohw", t, w,
                      precision=lax.Precision.HIGHEST) + b[None, :, None, None]


def reference_forward(x, params, *, heads, head_dim, fold_w, fold_h,
                      prop_w, prop_h):
    value = _conv1x1_ref(x, params["v_w"], params["v_b"])
    feat = _conv1x1_ref(x, params["f_w"], params["f_b"])
    C = head_dim

    def split_heads(t):
        b, ec, W0, H0 = t.shape
        return t.reshape(b * heads, C, W0, H0)

    def fold(t):
        b, c, W0, H0 = t.shape
        w, h = W0 // fold_w, H0 // fold_h
        t = t.reshape(b, c, fold_w, w, fold_h, h)
        t = jnp.transpose(t, (0, 2, 4, 1, 3, 5))
        return t.reshape(b * fold_w * fold_h, c, w, h)

    feat, value = fold(split_heads(feat)), fold(split_heads(value))
    b, c, w, h = feat.shape

    def avgpool(t):
        return t.reshape(b, c, prop_w, w // prop_w, prop_h,
                         h // prop_h).mean(axis=(3, 5))

    centers = avgpool(feat)
    value_centers = avgpool(value).reshape(b, c, -1).transpose(0, 2, 1)
    c_flat = centers.reshape(b, c, -1).transpose(0, 2, 1)
    x_flat = feat.reshape(b, c, -1).transpose(0, 2, 1)

    def norml(t):
        n = jnp.linalg.norm(t, axis=-1, keepdims=True)
        return t / jnp.maximum(n, 1e-12)

    cos = jnp.einsum("bmc,bnc->bmn", norml(c_flat), norml(x_flat),
                     precision=lax.Precision.HIGHEST)
    sim = jax.nn.sigmoid(params["sim_beta"][0] + params["sim_alpha"][0] * cos)
    idx = jnp.argmax(sim, axis=1)
    mask = jax.nn.one_hot(idx, sim.shape[1], axis=1, dtype=sim.dtype)
    simm = sim * mask
    value2 = value.reshape(b, c, -1).transpose(0, 2, 1)
    out = (jnp.einsum("bmn,bnc->bmc", simm, value2,
                      precision=lax.Precision.HIGHEST) + value_centers) / (
        mask.sum(axis=-1, keepdims=True) + 1.0)
    out = jnp.einsum("bmn,bmc->bnc", simm, out,
                     precision=lax.Precision.HIGHEST)
    out = out.transpose(0, 2, 1).reshape(b, c, w, h)
    bb = b // (fold_w * fold_h)
    out = out.reshape(bb, fold_w, fold_h, c, w, h)
    out = jnp.transpose(out, (0, 3, 1, 4, 2, 5)).reshape(
        bb, c, fold_w * w, fold_h * h)
    out = out.reshape(bb // heads, heads * c, fold_w * w, fold_h * h)
    return _conv1x1_ref(out, params["p_w"], params["p_b"])


# ----------------------------------- main -----------------------------------

if __name__ == "__main__":
    B, dim, W0, H0 = 2, 4, 16, 16
    heads, head_dim, out_dim = 4, 24, 8
    prop_w = prop_h = 2
    fold_w = fold_h = 2
    hd = heads * head_dim

    key = jax.random.PRNGKey(0)
    ks = jax.random.split(key, 7)
    params = {
        "f_w": 0.1 * jax.random.normal(ks[0], (dim, hd), jnp.float32),
        "f_b": 0.1 * jax.random.normal(ks[1], (hd,), jnp.float32),
        "v_w": 0.1 * jax.random.normal(ks[2], (dim, hd), jnp.float32),
        "v_b": 0.1 * jax.random.normal(ks[3], (hd,), jnp.float32),
        "p_w": 0.1 * jax.random.normal(ks[4], (hd, out_dim), jnp.float32),
        "p_b": 0.1 * jax.random.normal(ks[5], (out_dim,), jnp.float32),
        "sim_alpha": jnp.ones((1,), jnp.float32),   # nn.Parameter(torch.ones(1))
        "sim_beta": jnp.zeros((1,), jnp.float32),   # nn.Parameter(torch.zeros(1))
    }
    x = jax.random.normal(ks[6], (B, dim, W0, H0), jnp.float32)

    fwd = functools.partial(cluster_forward, heads=heads, head_dim=head_dim,
                            fold_w=fold_w, fold_h=fold_h,
                            prop_w=prop_w, prop_h=prop_h)
    out = jax.block_until_ready(fwd(x, params))

    ref = reference_forward(x, params, heads=heads, head_dim=head_dim,
                            fold_w=fold_w, fold_h=fold_h,
                            prop_w=prop_w, prop_h=prop_h)
    assert out.shape == (B, out_dim, W0, H0) and out.shape == ref.shape
    assert bool(jnp.all(jnp.isfinite(out)))
    # tolerate rare argmax tie flips from matmul rounding differences
    frac_close = float(jnp.mean((jnp.abs(out - ref) < 1e-2).astype(jnp.float32)))
    assert frac_close > 0.99, f"mismatch, frac_close={frac_close}"
    print("KERNEL_OK")
</pallas_src>

<mosaic_0001>
module attributes {stable_mosaic.version = 11 : i64} {
  func.func @_linear_kernel(%arg0: i32, %arg1: memref<512x4xf32, #tpu.memory_space<vmem>>, %arg2: memref<4x192xf32, #tpu.memory_space<vmem>>, %arg3: memref<1x192xf32, #tpu.memory_space<vmem>>, %arg4: memref<512x192xf32, #tpu.memory_space<vmem>>) attributes {dimension_semantics = [#tpu.dimension_semantics<parallel>], iteration_bounds = array<i64: 1>, scalar_prefetch = 0 : i64, scratch_operands = 0 : i64, tpu.core_type = #tpu.core_type<tc>, window_params = [{transform_indices = @transform_0, window_bounds = array<i64: 512, 4>}, {pipeline_mode = #tpu.pipeline_mode<synchronous>, transform_indices = @transform_1, window_bounds = array<i64: 4, 192>}, {pipeline_mode = #tpu.pipeline_mode<synchronous>, transform_indices = @transform_2, window_bounds = array<i64: 1, 192>}, {transform_indices = @transform_3, window_bounds = array<i64: 512, 192>}]} {
    %c0 = arith.constant 0 : index
    %c0_0 = arith.constant 0 : index
    %0 = vector.load %arg1[%c0, %c0_0] : memref<512x4xf32, #tpu.memory_space<vmem>>, vector<512x4xf32>
    %c0_1 = arith.constant 0 : index
    %c0_2 = arith.constant 0 : index
    %1 = vector.load %arg2[%c0_1, %c0_2] : memref<4x192xf32, #tpu.memory_space<vmem>>, vector<4x192xf32>
    %cst = arith.constant dense<0.000000e+00> : vector<512x192xf32>
    %2 = tpu.matmul %0, %1, %cst {dimension_numbers = #tpu.dot_dimension_numbers<[1], [0], [0], [1], [0, 0, 1, 1], [], []>} : vector<512x4xf32>, vector<4x192xf32>, vector<512x192xf32> -> vector<512x192xf32>
    %c0_3 = arith.constant 0 : index
    %c0_4 = arith.constant 0 : index
    %3 = vector.load %arg3[%c0_3, %c0_4] : memref<1x192xf32, #tpu.memory_space<vmem>>, vector<1x192xf32>
    %4 = vector.broadcast %3 : vector<1x192xf32> to vector<512x192xf32>
    %5 = arith.addf %2, %4 : vector<512x192xf32>
    %c0_5 = arith.constant 0 : index
    %c0_6 = arith.constant 0 : index
    %6 = vector.load %arg4[%c0_5, %c0_6] : memref<512x192xf32, #tpu.memory_space<vmem>>, vector<512x192xf32>
    tpu.vector_store %arg4[%c0_5, %c0_6], %5 {strides = array<i32>} : memref<512x192xf32, #tpu.memory_space<vmem>>, vector<512x192xf32>,
    return
  }
  func.func @transform_0(%arg0: i32) -> (i32, i32) {
    %c0_i32 = arith.constant 0 : i32
    %c0_i32_0 = arith.constant 0 : i32
    return %arg0, %c0_i32 : i32, i32
  }
  func.func @transform_1(%arg0: i32) -> (i32, i32) {
    %c0_i32 = arith.constant 0 : i32
    %c0_i32_0 = arith.constant 0 : i32
    %c0_i32_1 = arith.constant 0 : i32
    return %c0_i32, %c0_i32_0 : i32, i32
  }
  func.func @transform_2(%arg0: i32) -> (i32, i32) {
    %c0_i32 = arith.constant 0 : i32
    %c0_i32_0 = arith.constant 0 : i32
    %c0_i32_1 = arith.constant 0 : i32
    return %c0_i32, %c0_i32_0 : i32, i32
  }
  func.func @transform_3(%arg0: i32) -> (i32, i32) {
    %c0_i32 = arith.constant 0 : i32
    %c0_i32_0 = arith.constant 0 : i32
    return %arg0, %c0_i32 : i32, i32
  }
}

</mosaic_0001>

<bundles_post_ra>
// kernel: tpu_custom_call.1
= control target key start
LH: loop header
LB: loop body
LE: loop exit
PB: predicated region body
PF: predicated region fallthrough
CT: control target
= control target key end

     0   :  { %vm286_vm0 = vcmask 1043456   ;;  %v943_v1 = vmov 0.0   ;;  %vm93_vm1 = vcmask 31744   ;;  %vm741_vm2 = vcmask 523264   ;;  %s1870_s1 = inlined_call_operand.vmem [shape: f32[4,192], index: 1, kind: input, shape index: {}]   ;;  %s1871_s0 = inlined_call_operand.vmem [shape: f32[512,4], index: 0, kind: input, shape index: {}]   ;;  %s1872_s2 = inlined_call_operand.vmem [shape: f32[1,192], index: 2, kind: input, shape index: {}]   ;;  %s1873_s3 = inlined_call_operand.vmem [shape: f32[512,192], index: 3, kind: output, shape index: {}]  }
   0x1   :  { %v78_v0 = vld [vmem:[%s1870_s1] sm:$0xff]  ;;  %355 = vmatprep.mubr.f32.mxu0 %v943_v1  ;;  %547 = vmatprep.mubr.f32.mxu1 %v943_v1  ;;  %v15_v5 = vld [vmem:[%s1871_s0 + $0x8] sm:$0xff]  ;;  %v16_v7 = vld [vmem:[%s1871_s0 + $0x10] sm:$0xff] }
   0x2   :  { %v92_v2 = vcombine.high %v78_v0, %v78_v0  ;;  %v14_v3 = vld [vmem:[%s1871_s0] sm:$0xff]  ;;  %v47_v6 = vld [vmem:[%s1871_s0 + $0x108] sm:$0xff]  ;;  %v48_v8 = vld [vmem:[%s1871_s0 + $0x110] sm:$0xff] }
   0x3   :  { %v46_v4 = vld [vmem:[%s1871_s0 + $0x100] sm:$0xff]  ;;  %v17_v9 = vld [vmem:[%s1871_s0 + $0x18] sm:$0xff]  ;;  %v19_v13 = vld [vmem:[%s1871_s0 + $0x28] sm:$0xff] }
   0x4   :  { %873 = vmatprep.subr.msk.mxu0 %vm286_vm0, %v92_v2  ;;  %939 = vmatprep.subr.msk.mxu1 %vm286_vm0, %v92_v2  ;;  %v49_v10 = vld [vmem:[%s1871_s0 + $0x118] sm:$0xff]  ;;  %v18_v11 = vld [vmem:[%s1871_s0 + $0x20] sm:$0xff]  ;;  %v51_v14 = vld [vmem:[%s1871_s0 + $0x128] sm:$0xff] }
   0x5   :  { %874 = vmatpush1.msk.msra.mxu0 %vm286_vm0, %v78_v0  ;;  %940 = vmatpush1.msk.msra.mxu1 %vm286_vm0, %v78_v0  ;;  %v50_v12 = vld [vmem:[%s1871_s0 + $0x120] sm:$0xff]  ;;  %v20_v15 = vld [vmem:[%s1871_s0 + $0x30] sm:$0xff]  ;;  %v21_v17 = vld [vmem:[%s1871_s0 + $0x38] sm:$0xff] }
   0x6   :  { %875 = vmatmul.mubr.msk.f32.vlgmr.msra.gmra.mrb[0].mxu0 %vm93_vm1, %v14_v3  ;;  %907 = vmatmul.mubr.msk.f32.vlgmr.msra.gmra.mrb[0].mxu1 %vm93_vm1, %v46_v4  ;;  %v52_v16 = vld [vmem:[%s1871_s0 + $0x130] sm:$0xff]  ;;  %v53_v18 = vld [vmem:[%s1871_s0 + $0x138] sm:$0xff]  ;;  %v22_v19 = vld [vmem:[%s1871_s0 + $0x40] sm:$0xff]  ;;  %v81_v4 = vlaneseq }
   0x7   :  { %361 = vmatprep.mubr.f32.mxu0 %v943_v1  ;;  %553 = vmatprep.mubr.f32.mxu1 %v943_v1  ;;  %v54_v20 = vld [vmem:[%s1871_s0 + $0x140] sm:$0xff]  ;;  %v23_v21 = vld [vmem:[%s1871_s0 + $0x48] sm:$0xff]  ;;  %v24_v23 = vld [vmem:[%s1871_s0 + $0x50] sm:$0xff] }
   0x8   :  { %v55_v22 = vld [vmem:[%s1871_s0 + $0x148] sm:$0xff]  ;;  %v56_v24 = vld [vmem:[%s1871_s0 + $0x150] sm:$0xff]  ;;  %v25_v25 = vld [vmem:[%s1871_s0 + $0x58] sm:$0xff] }
   0x9   :  { %v57_v26 = vld [vmem:[%s1871_s0 + $0x158] sm:$0xff]  ;;  %v26_v27 = vld [vmem:[%s1871_s0 + $0x60] sm:$0xff]  ;;  %v27_v29 = vld [vmem:[%s1871_s0 + $0x68] sm:$0xff] }
   0xa   :  { %876 = vmatmul.mubr.msk.f32.gmra.mrb[2].mxu0 %vm93_vm1, %v15_v5  ;;  %908 = vmatmul.mubr.msk.f32.gmra.mrb[2].mxu1 %vm93_vm1, %v47_v6  ;;  %v58_v28 = vld [vmem:[%s1871_s0 + $0x160] sm:$0xff]  ;;  %v59_v30 = vld [vmem:[%s1871_s0 + $0x168] sm:$0xff]  ;;  %v28_v31 = vld [vmem:[%s1871_s0 + $0x70] sm:$0xff]  ;;  %v82_v5 = vshrl.u32 %v81_v4, 7 }
   0xb   :  { %367 = vmatprep.mubr.f32.mxu0 %v943_v1  ;;  %559 = vmatprep.mubr.f32.mxu1 %v943_v1  ;;  %v60_v32 = vld [vmem:[%s1871_s0 + $0x170] sm:$0xff]  ;;  %v29_v33 = vld [vmem:[%s1871_s0 + $0x78] sm:$0xff]  ;;  %v30_v35 = vld [vmem:[%s1871_s0 + $0x80] sm:$0xff] }
   0xc   :  { %v61_v34 = vld [vmem:[%s1871_s0 + $0x178] sm:$0xff]  ;;  %v62_v36 = vld [vmem:[%s1871_s0 + $0x180] sm:$0xff]  ;;  %v31_v37 = vld [vmem:[%s1871_s0 + $0x88] sm:$0xff]  ;;  %v83_v6 = vsub.s32 0, %v82_v5 }
   0xd   :  { %v63_v38 = vld [vmem:[%s1871_s0 + $0x188] sm:$0xff]  ;;  %v32_v39 = vld [vmem:[%s1871_s0 + $0x90] sm:$0xff]  ;;  %v33_v41 = vld [vmem:[%s1871_s0 + $0x98] sm:$0xff] }
   0xe   :  { %877 = vmatmul.mubr.msk.f32.gmra.mrb[4].mxu0 %vm93_vm1, %v16_v7  ;;  %909 = vmatmul.mubr.msk.f32.gmra.mrb[4].mxu1 %vm93_vm1, %v48_v8  ;;  %v64_v40 = vld [vmem:[%s1871_s0 + $0x190] sm:$0xff]  ;;  %v65_v42 = vld [vmem:[%s1871_s0 + $0x198] sm:$0xff]  ;;  %v34_v43 = vld [vmem:[%s1871_s0 + $0xa0] sm:$0xff] }
   0xf   :  { %373 = vmatprep.mubr.f32.mxu0 %v943_v1  ;;  %565 = vmatprep.mubr.f32.mxu1 %v943_v1  ;;  %v66_v44 = vld [vmem:[%s1871_s0 + $0x1a0] sm:$0xff]  ;;  %v35_v45 = vld [vmem:[%s1871_s0 + $0xa8] sm:$0xff]  ;;  %v36_v47 = vld [vmem:[%s1871_s0 + $0xb0] sm:$0xff] }
  0x10   :  { %v67_v46 = vld [vmem:[%s1871_s0 + $0x1a8] sm:$0xff]  ;;  %v68_v48 = vld [vmem:[%s1871_s0 + $0x1b0] sm:$0xff]  ;;  %v37_v49 = vld [vmem:[%s1871_s0 + $0xb8] sm:$0xff] }
  0x11   :  { %v69_v50 = vld [vmem:[%s1871_s0 + $0x1b8] sm:$0xff]  ;;  %v38_v51 = vld [vmem:[%s1871_s0 + $0xc0] sm:$0xff]  ;;  %v39_v53 = vld [vmem:[%s1871_s0 + $0xc8] sm:$0xff] }
  0x12   :  { %878 = vmatmul.mubr.msk.f32.gmra.mrb[6].mxu0 %vm93_vm1, %v17_v9  ;;  %910 = vmatmul.mubr.msk.f32.gmra.mrb[6].mxu1 %vm93_vm1, %v49_v10  ;;  %v70_v52 = vld [vmem:[%s1871_s0 + $0x1c0] sm:$0xff]  ;;  %v71_v54 = vld [vmem:[%s1871_s0 + $0x1c8] sm:$0xff]  ;;  %v40_v55 = vld [vmem:[%s1871_s0 + $0xd0] sm:$0xff] }
  0x13   :  { %379 = vmatprep.mubr.f32.mxu0 %v943_v1  ;;  %571 = vmatprep.mubr.f32.mxu1 %v943_v1  ;;  %v72_v56 = vld [vmem:[%s1871_s0 + $0x1d0] sm:$0xff]  ;;  %v41_v57 = vld [vmem:[%s1871_s0 + $0xd8] sm:$0xff]  ;;  %v42_v59 = vld [vmem:[%s1871_s0 + $0xe0] sm:$0xff] }
  0x14   :  { %v73_v58 = vld [vmem:[%s1871_s0 + $0x1d8] sm:$0xff]  ;;  %v74_v60 = vld [vmem:[%s1871_s0 + $0x1e0] sm:$0xff]  ;;  %v43_v61 = vld [vmem:[%s1871_s0 + $0xe8] sm:$0xff] }
  0x15   :  { %v75_v62 = vld [vmem:[%s1871_s0 + $0x1e8] sm:$0xff]  ;;  %v44_v63 = vld [vmem:[%s1871_s0 + $0xf0] sm:$0xff]  ;;  %v45_v2 = vld [vmem:[%s1871_s0 + $0xf8] sm:$0xff] }
  0x16   :  { %879 = vmatmul.mubr.msk.f32.gmra.mrb[8].mxu0 %vm93_vm1, %v18_v11  ;;  %911 = vmatmul.mubr.msk.f32.gmra.mrb[8].mxu1 %vm93_vm1, %v50_v12  ;;  %v76_v0 = vld [vmem:[%s1871_s0 + $0x1f0] sm:$0xff]  ;;  %v77_v3 = vld [vmem:[%s1871_s0 + $0x1f8] sm:$0xff]  ;;  %v79_v7 = vld [vmem:[%s1872_s2] sm:$0x3] }
  0x17   :  { %385 = vmatprep.mubr.f32.mxu0 %v943_v1  ;;  %577 = vmatprep.mubr.f32.mxu1 %v943_v1  ;;  %v1290_v8 = vrot.slane %v79_v7, %v83_v6 }
  0x1a   :  { %880 = vmatmul.mubr.msk.f32.gmra.mrb[10].mxu0 %vm93_vm1, %v19_v13  ;;  %912 = vmatmul.mubr.msk.f32.gmra.mrb[10].mxu1 %vm93_vm1, %v51_v14 }
  0x1b   :  { %391 = vmatprep.mubr.f32.mxu0 %v943_v1  ;;  %583 = vmatprep.mubr.f32.mxu1 %v943_v1 }
  0x1e   :  { %881 = vmatmul.mubr.msk.f32.gmra.mrb[12].mxu0 %vm93_vm1, %v20_v15  ;;  %913 = vmatmul.mubr.msk.f32.gmra.mrb[12].mxu1 %vm93_vm1, %v52_v16 }
  0x1f   :  { %397 = vmatprep.mubr.f32.mxu0 %v943_v1  ;;  %589 = vmatprep.mubr.f32.mxu1 %v943_v1 }
  0x22   :  { %882 = vmatmul.mubr.msk.f32.gmra.mrb[14].mxu0 %vm93_vm1, %v21_v17  ;;  %914 = vmatmul.mubr.msk.f32.gmra.mrb[14].mxu1 %vm93_vm1, %v53_v18 }
  0x23   :  { %403 = vmatprep.mubr.f32.mxu0 %v943_v1  ;;  %595 = vmatprep.mubr.f32.mxu1 %v943_v1 }
  0x26   :  { %883 = vmatmul.mubr.msk.f32.gmra.mrb[16].mxu0 %vm93_vm1, %v22_v19  ;;  %915 = vmatmul.mubr.msk.f32.gmra.mrb[16].mxu1 %vm93_vm1, %v54_v20 }
  0x27   :  { %409 = vmatprep.mubr.f32.mxu0 %v943_v1  ;;  %601 = vmatprep.mubr.f32.mxu1 %v943_v1 }
  0x2a   :  { %884 = vmatmul.mubr.msk.f32.gmra.mrb[18].mxu0 %vm93_vm1, %v23_v21  ;;  %916 = vmatmul.mubr.msk.f32.gmra.mrb[18].mxu1 %vm93_vm1, %v55_v22 }
  0x2b   :  { %415 = vmatprep.mubr.f32.mxu0 %v943_v1  ;;  %607 = vmatprep.mubr.f32.mxu1 %v943_v1 }
  0x2e   :  { %885 = vmatmul.mubr.msk.f32.gmra.mrb[20].mxu0 %vm93_vm1, %v24_v23  ;;  %917 = vmatmul.mubr.msk.f32.gmra.mrb[20].mxu1 %vm93_vm1, %v56_v24 }
  0x2f   :  { %421 = vmatprep.mubr.f32.mxu0 %v943_v1  ;;  %613 = vmatprep.mubr.f32.mxu1 %v943_v1 }
  0x32   :  { %886 = vmatmul.mubr.msk.f32.gmra.mrb[22].mxu0 %vm93_vm1, %v25_v25  ;;  %918 = vmatmul.mubr.msk.f32.gmra.mrb[22].mxu1 %vm93_vm1, %v57_v26 }
  0x33   :  { %427 = vmatprep.mubr.f32.mxu0 %v943_v1  ;;  %619 = vmatprep.mubr.f32.mxu1 %v943_v1 }
  0x36   :  { %887 = vmatmul.mubr.msk.f32.gmra.mrb[24].mxu0 %vm93_vm1, %v26_v27  ;;  %919 = vmatmul.mubr.msk.f32.gmra.mrb[24].mxu1 %vm93_vm1, %v58_v28 }
  0x37   :  { %433 = vmatprep.mubr.f32.mxu0 %v943_v1  ;;  %625 = vmatprep.mubr.f32.mxu1 %v943_v1 }
  0x3a   :  { %888 = vmatmul.mubr.msk.f32.gmra.mrb[26].mxu0 %vm93_vm1, %v27_v29  ;;  %920 = vmatmul.mubr.msk.f32.gmra.mrb[26].mxu1 %vm93_vm1, %v59_v30 }
  0x3b   :  { %439 = vmatprep.mubr.f32.mxu0 %v943_v1  ;;  %631 = vmatprep.mubr.f32.mxu1 %v943_v1 }
  0x3e   :  { %889 = vmatmul.mubr.msk.f32.gmra.mrb[28].mxu0 %vm93_vm1, %v28_v31  ;;  %921 = vmatmul.mubr.msk.f32.gmra.mrb[28].mxu1 %vm93_vm1, %v60_v32 }
  0x3f   :  { %445 = vmatprep.mubr.f32.mxu0 %v943_v1  ;;  %637 = vmatprep.mubr.f32.mxu1 %v943_v1 }
  0x42   :  { %890 = vmatmul.mubr.msk.f32.gmra.mrb[30].mxu0 %vm93_vm1, %v29_v33  ;;  %922 = vmatmul.mubr.msk.f32.gmra.mrb[30].mxu1 %vm93_vm1, %v61_v34 }
  0x43   :  { %451 = vmatprep.mubr.f32.mxu0 %v943_v1  ;;  %643 = vmatprep.mubr.f32.mxu1 %v943_v1 }
  0x46   :  { %891 = vmatmul.mubr.msk.f32.gmra.mrb[32].mxu0 %vm93_vm1, %v30_v35  ;;  %923 = vmatmul.mubr.msk.f32.gmra.mrb[32].mxu1 %vm93_vm1, %v62_v36 }
  0x47   :  { %457 = vmatprep.mubr.f32.mxu0 %v943_v1  ;;  %649 = vmatprep.mubr.f32.mxu1 %v943_v1 }
  0x4a   :  { %892 = vmatmul.mubr.msk.f32.gmra.mrb[34].mxu0 %vm93_vm1, %v31_v37  ;;  %924 = vmatmul.mubr.msk.f32.gmra.mrb[34].mxu1 %vm93_vm1, %v63_v38 }
  0x4b   :  { %463 = vmatprep.mubr.f32.mxu0 %v943_v1  ;;  %655 = vmatprep.mubr.f32.mxu1 %v943_v1 }
  0x4e   :  { %893 = vmatmul.mubr.msk.f32.gmra.mrb[36].mxu0 %vm93_vm1, %v32_v39  ;;  %925 = vmatmul.mubr.msk.f32.gmra.mrb[36].mxu1 %vm93_vm1, %v64_v40 }
  0x4f   :  { %469 = vmatprep.mubr.f32.mxu0 %v943_v1  ;;  %661 = vmatprep.mubr.f32.mxu1 %v943_v1 }
  0x52   :  { %894 = vmatmul.mubr.msk.f32.gmra.mrb[38].mxu0 %vm93_vm1, %v33_v41  ;;  %926 = vmatmul.mubr.msk.f32.gmra.mrb[38].mxu1 %vm93_vm1, %v65_v42 }
  0x53   :  { %475 = vmatprep.mubr.f32.mxu0 %v943_v1  ;;  %667 = vmatprep.mubr.f32.mxu1 %v943_v1 }
  0x56   :  { %895 = vmatmul.mubr.msk.f32.gmra.mrb[40].mxu0 %vm93_vm1, %v34_v43  ;;  %927 = vmatmul.mubr.msk.f32.gmra.mrb[40].mxu1 %vm93_vm1, %v66_v44 }
  0x57   :  { %481 = vmatprep.mubr.f32.mxu0 %v943_v1  ;;  %673 = vmatprep.mubr.f32.mxu1 %v943_v1 }
  0x5a   :  { %896 = vmatmul.mubr.msk.f32.gmra.mrb[42].mxu0 %vm93_vm1, %v35_v45  ;;  %928 = vmatmul.mubr.msk.f32.gmra.mrb[42].mxu1 %vm93_vm1, %v67_v46 }
  0x5b   :  { %487 = vmatprep.mubr.f32.mxu0 %v943_v1  ;;  %679 = vmatprep.mubr.f32.mxu1 %v943_v1 }
  0x5e   :  { %897 = vmatmul.mubr.msk.f32.gmra.mrb[44].mxu0 %vm93_vm1, %v36_v47  ;;  %929 = vmatmul.mubr.msk.f32.gmra.mrb[44].mxu1 %vm93_vm1, %v68_v48 }
  0x5f   :  { %493 = vmatprep.mubr.f32.mxu0 %v943_v1  ;;  %685 = vmatprep.mubr.f32.mxu1 %v943_v1 }
  0x62   :  { %898 = vmatmul.mubr.msk.f32.gmra.mrb[46].mxu0 %vm93_vm1, %v37_v49  ;;  %930 = vmatmul.mubr.msk.f32.gmra.mrb[46].mxu1 %vm93_vm1, %v69_v50 }
  0x63   :  { %499 = vmatprep.mubr.f32.mxu0 %v943_v1  ;;  %691 = vmatprep.mubr.f32.mxu1 %v943_v1 }
  0x66   :  { %899 = vmatmul.mubr.msk.f32.gmra.mrb[48].mxu0 %vm93_vm1, %v38_v51  ;;  %931 = vmatmul.mubr.msk.f32.gmra.mrb[48].mxu1 %vm93_vm1, %v70_v52 }
  0x67   :  { %505 = vmatprep.mubr.f32.mxu0 %v943_v1  ;;  %697 = vmatprep.mubr.f32.mxu1 %v943_v1 }
  0x6a   :  { %900 = vmatmul.mubr.msk.f32.gmra.mrb[50].mxu0 %vm93_vm1, %v39_v53  ;;  %932 = vmatmul.mubr.msk.f32.gmra.mrb[50].mxu1 %vm93_vm1, %v71_v54 }
  0x6b   :  { %511 = vmatprep.mubr.f32.mxu0 %v943_v1  ;;  %703 = vmatprep.mubr.f32.mxu1 %v943_v1 }
  0x6e   :  { %901 = vmatmul.mubr.msk.f32.gmra.mrb[52].mxu0 %vm93_vm1, %v40_v55  ;;  %933 = vmatmul.mubr.msk.f32.gmra.mrb[52].mxu1 %vm93_vm1, %v72_v56 }
  0x6f   :  { %517 = vmatprep.mubr.f32.mxu0 %v943_v1  ;;  %709 = vmatprep.mubr.f32.mxu1 %v943_v1 }
  0x72   :  { %902 = vmatmul.mubr.msk.f32.gmra.mrb[54].mxu0 %vm93_vm1, %v41_v57  ;;  %934 = vmatmul.mubr.msk.f32.gmra.mrb[54].mxu1 %vm93_vm1, %v73_v58 }
  0x73   :  { %523 = vmatprep.mubr.f32.mxu0 %v943_v1  ;;  %715 = vmatprep.mubr.f32.mxu1 %v943_v1 }
  0x76   :  { %903 = vmatmul.mubr.msk.f32.gmra.mrb[56].mxu0 %vm93_vm1, %v42_v59  ;;  %935 = vmatmul.mubr.msk.f32.gmra.mrb[56].mxu1 %vm93_vm1, %v74_v60 }
  0x77   :  { %529 = vmatprep.mubr.f32.mxu0 %v943_v1  ;;  %721 = vmatprep.mubr.f32.mxu1 %v943_v1 }
  0x7a   :  { %904 = vmatmul.mubr.msk.f32.gmra.mrb[58].mxu0 %vm93_vm1, %v43_v61  ;;  %936 = vmatmul.mubr.msk.f32.gmra.mrb[58].mxu1 %vm93_vm1, %v75_v62 }
  0x7b   :  { %535 = vmatprep.mubr.f32.mxu0 %v943_v1  ;;  %727 = vmatprep.mubr.f32.mxu1 %v943_v1 }
  0x7e   :  { %905 = vmatmul.mubr.msk.f32.gmra.mrb[60].mxu0 %vm93_vm1, %v44_v63  ;;  %937 = vmatmul.mubr.msk.f32.gmra.mrb[60].mxu1 %vm93_vm1, %v76_v0 }
  0x7f   :  { %541 = vmatprep.mubr.f32.mxu0 %v943_v1  ;;  %733 = vmatprep.mubr.f32.mxu1 %v943_v1  ;;  %v87_v1 = vsub.s32 1, %v82_v5 }
  0x81   :  { %v1292_v9 = vrot.slane %v79_v7, %v87_v1 }
  0x82   :  { %906 = vmatmul.mubr.msk.f32.gmra.mrb[62].mxu0 %vm93_vm1, %v45_v2  ;;  %938 = vmatmul.mubr.msk.f32.gmra.mrb[62].mxu1 %vm93_vm1, %v77_v3 }
  0xd9   :  { %v357_v10 = vpop.f32.mrb[0].mxu0  ;;  %v549_v11 = vpop.f32.mrb[0].mxu1 }
  0xda   :  { %v358_v12 = vadd.f32 %v357_v10, %v1290_v8  ;;  %v550_v13 = vadd.f32 %v549_v11, %v1290_v8  ;;  %v359_v14 = vpop.f32.mrb[1].mxu0  ;;  %v551_v15 = vpop.f32.mrb[1].mxu1 }
  0xdb   :  { %v360_v16 = vadd.f32 %v359_v14, %v1292_v9  ;;  %v552_v17 = vadd.f32 %v551_v15, %v1292_v9 }
  0xdc   :  { %740 = vst [vmem:[%s1873_s3] sm:$0xff] %v358_v12  ;;  %805 = vst [vmem:[%s1873_s3 + $0x200] sm:$0xff] %v550_v13 }
  0xdd   :  { %742 = vst.msk [vmem:[%s1873_s3 + $0x8] sm:$0xff] %vm741_vm2, %v360_v16  ;;  %806 = vst.msk [vmem:[%s1873_s3 + $0x208] sm:$0xff] %vm741_vm2, %v552_v17  ;;  %v363_v18 = vpop.f32.mrb[2].mxu0  ;;  %v555_v19 = vpop.f32.mrb[2].mxu1 }
  0xde   :  { %v364_v20 = vadd.f32 %v363_v18, %v1290_v8  ;;  %v556_v21 = vadd.f32 %v555_v19, %v1290_v8  ;;  %v365_v22 = vpop.f32.mrb[3].mxu0  ;;  %v557_v23 = vpop.f32.mrb[3].mxu1 }
  0xdf   :  { %v366_v24 = vadd.f32 %v365_v22, %v1292_v9  ;;  %v558_v25 = vadd.f32 %v557_v23, %v1292_v9 }
  0xe0   :  { %743 = vst [vmem:[%s1873_s3 + $0x10] sm:$0xff] %v364_v20  ;;  %807 = vst [vmem:[%s1873_s3 + $0x210] sm:$0xff] %v556_v21 }
  0xe1   :  { %744 = vst.msk [vmem:[%s1873_s3 + $0x18] sm:$0xff] %vm741_vm2, %v366_v24  ;;  %808 = vst.msk [vmem:[%s1873_s3 + $0x218] sm:$0xff] %vm741_vm2, %v558_v25  ;;  %v369_v26 = vpop.f32.mrb[4].mxu0  ;;  %v561_v27 = vpop.f32.mrb[4].mxu1 }
  0xe2   :  { %v370_v28 = vadd.f32 %v369_v26, %v1290_v8  ;;  %v562_v29 = vadd.f32 %v561_v27, %v1290_v8  ;;  %v371_v30 = vpop.f32.mrb[5].mxu0  ;;  %v563_v31 = vpop.f32.mrb[5].mxu1 }
  0xe3   :  { %v372_v32 = vadd.f32 %v371_v30, %v1292_v9  ;;  %v564_v33 = vadd.f32 %v563_v31, %v1292_v9 }
  0xe4   :  { %745 = vst [vmem:[%s1873_s3 + $0x20] sm:$0xff] %v370_v28  ;;  %809 = vst [vmem:[%s1873_s3 + $0x220] sm:$0xff] %v562_v29 }
  0xe5   :  { %746 = vst.msk [vmem:[%s1873_s3 + $0x28] sm:$0xff] %vm741_vm2, %v372_v32  ;;  %810 = vst.msk [vmem:[%s1873_s3 + $0x228] sm:$0xff] %vm741_vm2, %v564_v33  ;;  %v375_v34 = vpop.f32.mrb[6].mxu0  ;;  %v567_v35 = vpop.f32.mrb[6].mxu1 }
  0xe6   :  { %v376_v36 = vadd.f32 %v375_v34, %v1290_v8  ;;  %v568_v37 = vadd.f32 %v567_v35, %v1290_v8  ;;  %v377_v38 = vpop.f32.mrb[7].mxu0  ;;  %v569_v39 = vpop.f32.mrb[7].mxu1 }
  0xe7   :  { %v378_v40 = vadd.f32 %v377_v38, %v1292_v9  ;;  %v570_v41 = vadd.f32 %v569_v39, %v1292_v9 }
  0xe8   :  { %747 = vst [vmem:[%s1873_s3 + $0x30] sm:$0xff] %v376_v36  ;;  %811 = vst [vmem:[%s1873_s3 + $0x230] sm:$0xff] %v568_v37 }
  0xe9   :  { %748 = vst.msk [vmem:[%s1873_s3 + $0x38] sm:$0xff] %vm741_vm2, %v378_v40  ;;  %812 = vst.msk [vmem:[%s1873_s3 + $0x238] sm:$0xff] %vm741_vm2, %v570_v41  ;;  %v381_v42 = vpop.f32.mrb[8].mxu0  ;;  %v573_v43 = vpop.f32.mrb[8].mxu1 }
  0xea   :  { %v382_v44 = vadd.f32 %v381_v42, %v1290_v8  ;;  %v574_v45 = vadd.f32 %v573_v43, %v1290_v8  ;;  %v383_v46 = vpop.f32.mrb[9].mxu0  ;;  %v575_v47 = vpop.f32.mrb[9].mxu1 }
  0xeb   :  { %v384_v48 = vadd.f32 %v383_v46, %v1292_v9  ;;  %v576_v49 = vadd.f32 %v575_v47, %v1292_v9 }
  0xec   :  { %749 = vst [vmem:[%s1873_s3 + $0x40] sm:$0xff] %v382_v44  ;;  %813 = vst [vmem:[%s1873_s3 + $0x240] sm:$0xff] %v574_v45 }
  0xed   :  { %750 = vst.msk [vmem:[%s1873_s3 + $0x48] sm:$0xff] %vm741_vm2, %v384_v48  ;;  %814 = vst.msk [vmem:[%s1873_s3 + $0x248] sm:$0xff] %vm741_vm2, %v576_v49  ;;  %v387_v50 = vpop.f32.mrb[10].mxu0  ;;  %v579_v51 = vpop.f32.mrb[10].mxu1 }
  0xee   :  { %v388_v52 = vadd.f32 %v387_v50, %v1290_v8  ;;  %v580_v53 = vadd.f32 %v579_v51, %v1290_v8  ;;  %v389_v54 = vpop.f32.mrb[11].mxu0  ;;  %v581_v55 = vpop.f32.mrb[11].mxu1 }
  0xef   :  { %v390_v56 = vadd.f32 %v389_v54, %v1292_v9  ;;  %v582_v57 = vadd.f32 %v581_v55, %v1292_v9 }
  0xf0   :  { %751 = vst [vmem:[%s1873_s3 + $0x50] sm:$0xff] %v388_v52  ;;  %815 = vst [vmem:[%s1873_s3 + $0x250] sm:$0xff] %v580_v53 }
  0xf1   :  { %752 = vst.msk [vmem:[%s1873_s3 + $0x58] sm:$0xff] %vm741_vm2, %v390_v56  ;;  %816 = vst.msk [vmem:[%s1873_s3 + $0x258] sm:$0xff] %vm741_vm2, %v582_v57  ;;  %v393_v58 = vpop.f32.mrb[12].mxu0  ;;  %v585_v59 = vpop.f32.mrb[12].mxu1 }
  0xf2   :  { %v394_v60 = vadd.f32 %v393_v58, %v1290_v8  ;;  %v586_v61 = vadd.f32 %v585_v59, %v1290_v8  ;;  %v395_v62 = vpop.f32.mrb[13].mxu0  ;;  %v587_v63 = vpop.f32.mrb[13].mxu1 }
  0xf3   :  { %v396_v0 = vadd.f32 %v395_v62, %v1292_v9  ;;  %v588_v2 = vadd.f32 %v587_v63, %v1292_v9 }
  0xf4   :  { %753 = vst [vmem:[%s1873_s3 + $0x60] sm:$0xff] %v394_v60  ;;  %817 = vst [vmem:[%s1873_s3 + $0x260] sm:$0xff] %v586_v61 }
  0xf5   :  { %754 = vst.msk [vmem:[%s1873_s3 + $0x68] sm:$0xff] %vm741_vm2, %v396_v0  ;;  %818 = vst.msk [vmem:[%s1873_s3 + $0x268] sm:$0xff] %vm741_vm2, %v588_v2  ;;  %v399_v3 = vpop.f32.mrb[14].mxu0  ;;  %v591_v4 = vpop.f32.mrb[14].mxu1 }
  0xf6   :  { %v400_v5 = vadd.f32 %v399_v3, %v1290_v8  ;;  %v592_v6 = vadd.f32 %v591_v4, %v1290_v8  ;;  %v401_v7 = vpop.f32.mrb[15].mxu0  ;;  %v593_v1 = vpop.f32.mrb[15].mxu1 }
  0xf7   :  { %v402_v10 = vadd.f32 %v401_v7, %v1292_v9  ;;  %v594_v11 = vadd.f32 %v593_v1, %v1292_v9 }
  0xf8   :  { %755 = vst [vmem:[%s1873_s3 + $0x70] sm:$0xff] %v400_v5  ;;  %819 = vst [vmem:[%s1873_s3 + $0x270] sm:$0xff] %v592_v6 }
  0xf9   :  { %756 = vst.msk [vmem:[%s1873_s3 + $0x78] sm:$0xff] %vm741_vm2, %v402_v10  ;;  %820 = vst.msk [vmem:[%s1873_s3 + $0x278] sm:$0xff] %vm741_vm2, %v594_v11  ;;  %v405_v12 = vpop.f32.mrb[16].mxu0  ;;  %v597_v13 = vpop.f32.mrb[16].mxu1 }
  0xfa   :  { %v406_v14 = vadd.f32 %v405_v12, %v1290_v8  ;;  %v598_v15 = vadd.f32 %v597_v13, %v1290_v8  ;;  %v407_v16 = vpop.f32.mrb[17].mxu0  ;;  %v599_v17 = vpop.f32.mrb[17].mxu1 }
  0xfb   :  { %v408_v18 = vadd.f32 %v407_v16, %v1292_v9  ;;  %v600_v19 = vadd.f32 %v599_v17, %v1292_v9 }
  0xfc   :  { %757 = vst [vmem:[%s1873_s3 + $0x80] sm:$0xff] %v406_v14  ;;  %821 = vst [vmem:[%s1873_s3 + $0x280] sm:$0xff] %v598_v15 }
  0xfd   :  { %758 = vst.msk [vmem:[%s1873_s3 + $0x88] sm:$0xff] %vm741_vm2, %v408_v18  ;;  %822 = vst.msk [vmem:[%s1873_s3 + $0x288] sm:$0xff] %vm741_vm2, %v600_v19  ;;  %v411_v20 = vpop.f32.mrb[18].mxu0  ;;  %v603_v21 = vpop.f32.mrb[18].mxu1 }
  0xfe   :  { %v412_v22 = vadd.f32 %v411_v20, %v1290_v8  ;;  %v604_v23 = vadd.f32 %v603_v21, %v1290_v8  ;;  %v413_v24 = vpop.f32.mrb[19].mxu0  ;;  %v605_v25 = vpop.f32.mrb[19].mxu1 }
  0xff   :  { %v414_v26 = vadd.f32 %v413_v24, %v1292_v9  ;;  %v606_v27 = vadd.f32 %v605_v25, %v1292_v9 }
 0x100   :  { %759 = vst [vmem:[%s1873_s3 + $0x90] sm:$0xff] %v412_v22  ;;  %823 = vst [vmem:[%s1873_s3 + $0x290] sm:$0xff] %v604_v23 }
 0x101   :  { %760 = vst.msk [vmem:[%s1873_s3 + $0x98] sm:$0xff] %vm741_vm2, %v414_v26  ;;  %824 = vst.msk [vmem:[%s1873_s3 + $0x298] sm:$0xff] %vm741_vm2, %v606_v27  ;;  %v417_v28 = vpop.f32.mrb[20].mxu0  ;;  %v609_v29 = vpop.f32.mrb[20].mxu1 }
 0x102   :  { %v418_v30 = vadd.f32 %v417_v28, %v1290_v8  ;;  %v610_v31 = vadd.f32 %v609_v29, %v1290_v8  ;;  %v419_v32 = vpop.f32.mrb[21].mxu0  ;;  %v611_v33 = vpop.f32.mrb[21].mxu1 }
 0x103   :  { %v420_v34 = vadd.f32 %v419_v32, %v1292_v9  ;;  %v612_v35 = vadd.f32 %v611_v33, %v1292_v9 }
 0x104   :  { %761 = vst [vmem:[%s1873_s3 + $0xa0] sm:$0xff] %v418_v30  ;;  %825 = vst [vmem:[%s1873_s3 + $0x2a0] sm:$0xff] %v610_v31 }
 0x105   :  { %762 = vst.msk [vmem:[%s1873_s3 + $0xa8] sm:$0xff] %vm741_vm2, %v420_v34  ;;  %826 = vst.msk [vmem:[%s1873_s3 + $0x2a8] sm:$0xff] %vm741_vm2, %v612_v35  ;;  %v423_v36 = vpop.f32.mrb[22].mxu0  ;;  %v615_v37 = vpop.f32.mrb[22].mxu1 }
 0x106   :  { %v424_v38 = vadd.f32 %v423_v36, %v1290_v8  ;;  %v616_v39 = vadd.f32 %v615_v37, %v1290_v8  ;;  %v425_v40 = vpop.f32.mrb[23].mxu0  ;;  %v617_v41 = vpop.f32.mrb[23].mxu1 }
 0x107   :  { %v426_v42 = vadd.f32 %v425_v40, %v1292_v9  ;;  %v618_v43 = vadd.f32 %v617_v41, %v1292_v9 }
 0x108   :  { %763 = vst [vmem:[%s1873_s3 + $0xb0] sm:$0xff] %v424_v38  ;;  %827 = vst [vmem:[%s1873_s3 + $0x2b0] sm:$0xff] %v616_v39 }
 0x109   :  { %764 = vst.msk [vmem:[%s1873_s3 + $0xb8] sm:$0xff] %vm741_vm2, %v426_v42  ;;  %828 = vst.msk [vmem:[%s1873_s3 + $0x2b8] sm:$0xff] %vm741_vm2, %v618_v43  ;;  %v429_v44 = vpop.f32.mrb[24].mxu0  ;;  %v621_v45 = vpop.f32.mrb[24].mxu1 }
 0x10a   :  { %v430_v46 = vadd.f32 %v429_v44, %v1290_v8  ;;  %v622_v47 = vadd.f32 %v621_v45, %v1290_v8  ;;  %v431_v48 = vpop.f32.mrb[25].mxu0  ;;  %v623_v49 = vpop.f32.mrb[25].mxu1 }
 0x10b   :  { %v432_v50 = vadd.f32 %v431_v48, %v1292_v9  ;;  %v624_v51 = vadd.f32 %v623_v49, %v1292_v9 }
 0x10c   :  { %765 = vst [vmem:[%s1873_s3 + $0xc0] sm:$0xff] %v430_v46  ;;  %829 = vst [vmem:[%s1873_s3 + $0x2c0] sm:$0xff] %v622_v47 }
 0x10d   :  { %766 = vst.msk [vmem:[%s1873_s3 + $0xc8] sm:$0xff] %vm741_vm2, %v432_v50  ;;  %830 = vst.msk [vmem:[%s1873_s3 + $0x2c8] sm:$0xff] %vm741_vm2, %v624_v51  ;;  %v435_v52 = vpop.f32.mrb[26].mxu0  ;;  %v627_v53 = vpop.f32.mrb[26].mxu1 }
 0x10e   :  { %v436_v54 = vadd.f32 %v435_v52, %v1290_v8  ;;  %v628_v55 = vadd.f32 %v627_v53, %v1290_v8  ;;  %v437_v56 = vpop.f32.mrb[27].mxu0  ;;  %v629_v57 = vpop.f32.mrb[27].mxu1 }
 0x10f   :  { %v438_v58 = vadd.f32 %v437_v56, %v1292_v9  ;;  %v630_v59 = vadd.f32 %v629_v57, %v1292_v9 }
 0x110   :  { %767 = vst [vmem:[%s1873_s3 + $0xd0] sm:$0xff] %v436_v54  ;;  %831 = vst [vmem:[%s1873_s3 + $0x2d0] sm:$0xff] %v628_v55 }
 0x111   :  { %768 = vst.msk [vmem:[%s1873_s3 + $0xd8] sm:$0xff] %vm741_vm2, %v438_v58  ;;  %832 = vst.msk [vmem:[%s1873_s3 + $0x2d8] sm:$0xff] %vm741_vm2, %v630_v59  ;;  %v441_v60 = vpop.f32.mrb[28].mxu0  ;;  %v633_v61 = vpop.f32.mrb[28].mxu1 }
 0x112   :  { %v442_v62 = vadd.f32 %v441_v60, %v1290_v8  ;;  %v634_v63 = vadd.f32 %v633_v61, %v1290_v8  ;;  %v443_v0 = vpop.f32.mrb[29].mxu0  ;;  %v635_v2 = vpop.f32.mrb[29].mxu1 }
 0x113   :  { %v444_v3 = vadd.f32 %v443_v0, %v1292_v9  ;;  %v636_v4 = vadd.f32 %v635_v2, %v1292_v9 }
 0x114   :  { %769 = vst [vmem:[%s1873_s3 + $0xe0] sm:$0xff] %v442_v62  ;;  %833 = vst [vmem:[%s1873_s3 + $0x2e0] sm:$0xff] %v634_v63 }
 0x115   :  { %770 = vst.msk [vmem:[%s1873_s3 + $0xe8] sm:$0xff] %vm741_vm2, %v444_v3  ;;  %834 = vst.msk [vmem:[%s1873_s3 + $0x2e8] sm:$0xff] %vm741_vm2, %v636_v4  ;;  %v447_v5 = vpop.f32.mrb[30].mxu0  ;;  %v639_v6 = vpop.f32.mrb[30].mxu1 }
 0x116   :  { %v448_v7 = vadd.f32 %v447_v5, %v1290_v8  ;;  %v640_v1 = vadd.f32 %v639_v6, %v1290_v8  ;;  %v449_v10 = vpop.f32.mrb[31].mxu0  ;;  %v641_v11 = vpop.f32.mrb[31].mxu1 }
 0x117   :  { %v450_v12 = vadd.f32 %v449_v10, %v1292_v9  ;;  %v642_v13 = vadd.f32 %v641_v11, %v1292_v9 }
 0x118   :  { %771 = vst [vmem:[%s1873_s3 + $0xf0] sm:$0xff] %v448_v7  ;;  %835 = vst [vmem:[%s1873_s3 + $0x2f0] sm:$0xff] %v640_v1 }
 0x119   :  { %772 = vst.msk [vmem:[%s1873_s3 + $0xf8] sm:$0xff] %vm741_vm2, %v450_v12  ;;  %836 = vst.msk [vmem:[%s1873_s3 + $0x2f8] sm:$0xff] %vm741_vm2, %v642_v13  ;;  %v453_v14 = vpop.f32.mrb[32].mxu0  ;;  %v645_v15 = vpop.f32.mrb[32].mxu1 }
 0x11a   :  { %v454_v16 = vadd.f32 %v453_v14, %v1290_v8  ;;  %v646_v17 = vadd.f32 %v645_v15, %v1290_v8  ;;  %v455_v18 = vpop.f32.mrb[33].mxu0  ;;  %v647_v19 = vpop.f32.mrb[33].mxu1 }
 0x11b   :  { %v456_v20 = vadd.f32 %v455_v18, %v1292_v9  ;;  %v648_v21 = vadd.f32 %v647_v19, %v1292_v9 }
 0x11c   :  { %773 = vst [vmem:[%s1873_s3 + $0x100] sm:$0xff] %v454_v16  ;;  %837 = vst [vmem:[%s1873_s3 + $0x300] sm:$0xff] %v646_v17 }
 0x11d   :  { %774 = vst.msk [vmem:[%s1873_s3 + $0x108] sm:$0xff] %vm741_vm2, %v456_v20  ;;  %838 = vst.msk [vmem:[%s1873_s3 + $0x308] sm:$0xff] %vm741_vm2, %v648_v21  ;;  %v459_v22 = vpop.f32.mrb[34].mxu0  ;;  %v651_v23 = vpop.f32.mrb[34].mxu1 }
 0x11e   :  { %v460_v24 = vadd.f32 %v459_v22, %v1290_v8  ;;  %v652_v25 = vadd.f32 %v651_v23, %v1290_v8  ;;  %v461_v26 = vpop.f32.mrb[35].mxu0  ;;  %v653_v27 = vpop.f32.mrb[35].mxu1 }
 0x11f   :  { %v462_v28 = vadd.f32 %v461_v26, %v1292_v9  ;;  %v654_v29 = vadd.f32 %v653_v27, %v1292_v9 }
 0x120   :  { %775 = vst [vmem:[%s1873_s3 + $0x110] sm:$0xff] %v460_v24  ;;  %839 = vst [vmem:[%s1873_s3 + $0x310] sm:$0xff] %v652_v25 }
 0x121   :  { %776 = vst.msk [vmem:[%s1873_s3 + $0x118] sm:$0xff] %vm741_vm2, %v462_v28  ;;  %840 = vst.msk [vmem:[%s1873_s3 + $0x318] sm:$0xff] %vm741_vm2, %v654_v29  ;;  %v465_v30 = vpop.f32.mrb[36].mxu0  ;;  %v657_v31 = vpop.f32.mrb[36].mxu1 }
 0x122   :  { %v466_v32 = vadd.f32 %v465_v30, %v1290_v8  ;;  %v658_v33 = vadd.f32 %v657_v31, %v1290_v8  ;;  %v467_v34 = vpop.f32.mrb[37].mxu0  ;;  %v659_v35 = vpop.f32.mrb[37].mxu1 }
 0x123   :  { %v468_v36 = vadd.f32 %v467_v34, %v1292_v9  ;;  %v660_v37 = vadd.f32 %v659_v35, %v1292_v9 }
 0x124   :  { %777 = vst [vmem:[%s1873_s3 + $0x120] sm:$0xff] %v466_v32  ;;  %841 = vst [vmem:[%s1873_s3 + $0x320] sm:$0xff] %v658_v33 }
 0x125   :  { %778 = vst.msk [vmem:[%s1873_s3 + $0x128] sm:$0xff] %vm741_vm2, %v468_v36  ;;  %842 = vst.msk [vmem:[%s1873_s3 + $0x328] sm:$0xff] %vm741_vm2, %v660_v37  ;;  %v471_v38 = vpop.f32.mrb[38].mxu0  ;;  %v663_v39 = vpop.f32.mrb[38].mxu1 }
 0x126   :  { %v472_v40 = vadd.f32 %v471_v38, %v1290_v8  ;;  %v664_v41 = vadd.f32 %v663_v39, %v1290_v8  ;;  %v473_v42 = vpop.f32.mrb[39].mxu0  ;;  %v665_v43 = vpop.f32.mrb[39].mxu1 }
 0x127   :  { %v474_v44 = vadd.f32 %v473_v42, %v1292_v9  ;;  %v666_v45 = vadd.f32 %v665_v43, %v1292_v9 }
 0x128   :  { %779 = vst [vmem:[%s1873_s3 + $0x130] sm:$0xff] %v472_v40  ;;  %843 = vst [vmem:[%s1873_s3 + $0x330] sm:$0xff] %v664_v41 }
 0x129   :  { %780 = vst.msk [vmem:[%s1873_s3 + $0x138] sm:$0xff] %vm741_vm2, %v474_v44  ;;  %844 = vst.msk [vmem:[%s1873_s3 + $0x338] sm:$0xff] %vm741_vm2, %v666_v45  ;;  %v477_v46 = vpop.f32.mrb[40].mxu0  ;;  %v669_v47 = vpop.f32.mrb[40].mxu1 }
 0x12a   :  { %v478_v48 = vadd.f32 %v477_v46, %v1290_v8  ;;  %v670_v49 = vadd.f32 %v669_v47, %v1290_v8  ;;  %v479_v50 = vpop.f32.mrb[41].mxu0  ;;  %v671_v51 = vpop.f32.mrb[41].mxu1 }
 0x12b   :  { %v480_v52 = vadd.f32 %v479_v50, %v1292_v9  ;;  %v672_v53 = vadd.f32 %v671_v51, %v1292_v9 }
 0x12c   :  { %781 = vst [vmem:[%s1873_s3 + $0x140] sm:$0xff] %v478_v48  ;;  %845 = vst [vmem:[%s1873_s3 + $0x340] sm:$0xff] %v670_v49 }
 0x12d   :  { %782 = vst.msk [vmem:[%s1873_s3 + $0x148] sm:$0xff] %vm741_vm2, %v480_v52  ;;  %846 = vst.msk [vmem:[%s1873_s3 + $0x348] sm:$0xff] %vm741_vm2, %v672_v53  ;;  %v483_v54 = vpop.f32.mrb[42].mxu0  ;;  %v675_v55 = vpop.f32.mrb[42].mxu1 }
 0x12e   :  { %v484_v56 = vadd.f32 %v483_v54, %v1290_v8  ;;  %v676_v57 = vadd.f32 %v675_v55, %v1290_v8  ;;  %v485_v58 = vpop.f32.mrb[43].mxu0  ;;  %v677_v59 = vpop.f32.mrb[43].mxu1 }
 0x12f   :  { %v486_v60 = vadd.f32 %v485_v58, %v1292_v9  ;;  %v678_v61 = vadd.f32 %v677_v59, %v1292_v9 }
 0x130   :  { %783 = vst [vmem:[%s1873_s3 + $0x150] sm:$0xff] %v484_v56  ;;  %847 = vst [vmem:[%s1873_s3 + $0x350] sm:$0xff] %v676_v57 }
 0x131   :  { %784 = vst.msk [vmem:[%s1873_s3 + $0x158] sm:$0xff] %vm741_vm2, %v486_v60  ;;  %848 = vst.msk [vmem:[%s1873_s3 + $0x358] sm:$0xff] %vm741_vm2, %v678_v61  ;;  %v489_v62 = vpop.f32.mrb[44].mxu0  ;;  %v681_v63 = vpop.f32.mrb[44].mxu1 }
 0x132   :  { %v490_v0 = vadd.f32 %v489_v62, %v1290_v8  ;;  %v682_v2 = vadd.f32 %v681_v63, %v1290_v8  ;;  %v491_v3 = vpop.f32.mrb[45].mxu0  ;;  %v683_v4 = vpop.f32.mrb[45].mxu1 }
 0x133   :  { %v492_v5 = vadd.f32 %v491_v3, %v1292_v9  ;;  %v684_v6 = vadd.f32 %v683_v4, %v1292_v9 }
 0x134   :  { %785 = vst [vmem:[%s1873_s3 + $0x160] sm:$0xff] %v490_v0  ;;  %849 = vst [vmem:[%s1873_s3 + $0x360] sm:$0xff] %v682_v2 }
 0x135   :  { %786 = vst.msk [vmem:[%s1873_s3 + $0x168] sm:$0xff] %vm741_vm2, %v492_v5  ;;  %850 = vst.msk [vmem:[%s1873_s3 + $0x368] sm:$0xff] %vm741_vm2, %v684_v6  ;;  %v495_v7 = vpop.f32.mrb[46].mxu0  ;;  %v687_v1 = vpop.f32.mrb[46].mxu1 }
 0x136   :  { %v496_v10 = vadd.f32 %v495_v7, %v1290_v8  ;;  %v688_v11 = vadd.f32 %v687_v1, %v1290_v8  ;;  %v497_v12 = vpop.f32.mrb[47].mxu0  ;;  %v689_v13 = vpop.f32.mrb[47].mxu1 }
 0x137   :  { %v498_v14 = vadd.f32 %v497_v12, %v1292_v9  ;;  %v690_v15 = vadd.f32 %v689_v13, %v1292_v9 }
 0x138   :  { %787 = vst [vmem:[%s1873_s3 + $0x170] sm:$0xff] %v496_v10  ;;  %851 = vst [vmem:[%s1873_s3 + $0x370] sm:$0xff] %v688_v11 }
 0x139   :  { %788 = vst.msk [vmem:[%s1873_s3 + $0x178] sm:$0xff] %vm741_vm2, %v498_v14  ;;  %852 = vst.msk [vmem:[%s1873_s3 + $0x378] sm:$0xff] %vm741_vm2, %v690_v15  ;;  %v501_v16 = vpop.f32.mrb[48].mxu0  ;;  %v693_v17 = vpop.f32.mrb[48].mxu1 }
 0x13a   :  { %v502_v18 = vadd.f32 %v501_v16, %v1290_v8  ;;  %v694_v19 = vadd.f32 %v693_v17, %v1290_v8  ;;  %v503_v20 = vpop.f32.mrb[49].mxu0  ;;  %v695_v21 = vpop.f32.mrb[49].mxu1 }
 0x13b   :  { %v504_v22 = vadd.f32 %v503_v20, %v1292_v9  ;;  %v696_v23 = vadd.f32 %v695_v21, %v1292_v9 }
 0x13c   :  { %789 = vst [vmem:[%s1873_s3 + $0x180] sm:$0xff] %v502_v18  ;;  %853 = vst [vmem:[%s1873_s3 + $0x380] sm:$0xff] %v694_v19 }
 0x13d   :  { %790 = vst.msk [vmem:[%s1873_s3 + $0x188] sm:$0xff] %vm741_vm2, %v504_v22  ;;  %854 = vst.msk [vmem:[%s1873_s3 + $0x388] sm:$0xff] %vm741_vm2, %v696_v23  ;;  %v507_v24 = vpop.f32.mrb[50].mxu0  ;;  %v699_v25 = vpop.f32.mrb[50].mxu1 }
 0x13e   :  { %v508_v26 = vadd.f32 %v507_v24, %v1290_v8  ;;  %v700_v27 = vadd.f32 %v699_v25, %v1290_v8  ;;  %v509_v28 = vpop.f32.mrb[51].mxu0  ;;  %v701_v29 = vpop.f32.mrb[51].mxu1 }
 0x13f   :  { %v510_v30 = vadd.f32 %v509_v28, %v1292_v9  ;;  %v702_v31 = vadd.f32 %v701_v29, %v1292_v9 }
 0x140   :  { %791 = vst [vmem:[%s1873_s3 + $0x190] sm:$0xff] %v508_v26  ;;  %855 = vst [vmem:[%s1873_s3 + $0x390] sm:$0xff] %v700_v27 }
 0x141   :  { %792 = vst.msk [vmem:[%s1873_s3 + $0x198] sm:$0xff] %vm741_vm2, %v510_v30  ;;  %856 = vst.msk [vmem:[%s1873_s3 + $0x398] sm:$0xff] %vm741_vm2, %v702_v31  ;;  %v513_v32 = vpop.f32.mrb[52].mxu0  ;;  %v705_v33 = vpop.f32.mrb[52].mxu1 }
 0x142   :  { %v514_v34 = vadd.f32 %v513_v32, %v1290_v8  ;;  %v706_v35 = vadd.f32 %v705_v33, %v1290_v8  ;;  %v515_v36 = vpop.f32.mrb[53].mxu0  ;;  %v707_v37 = vpop.f32.mrb[53].mxu1 }
 0x143   :  { %v516_v38 = vadd.f32 %v515_v36, %v1292_v9  ;;  %v708_v39 = vadd.f32 %v707_v37, %v1292_v9 }
 0x144   :  { %793 = vst [vmem:[%s1873_s3 + $0x1a0] sm:$0xff] %v514_v34  ;;  %857 = vst [vmem:[%s1873_s3 + $0x3a0] sm:$0xff] %v706_v35 }
 0x145   :  { %794 = vst.msk [vmem:[%s1873_s3 + $0x1a8] sm:$0xff] %vm741_vm2, %v516_v38  ;;  %858 = vst.msk [vmem:[%s1873_s3 + $0x3a8] sm:$0xff] %vm741_vm2, %v708_v39  ;;  %v519_v40 = vpop.f32.mrb[54].mxu0  ;;  %v711_v41 = vpop.f32.mrb[54].mxu1 }
 0x146   :  { %v520_v42 = vadd.f32 %v519_v40, %v1290_v8  ;;  %v712_v43 = vadd.f32 %v711_v41, %v1290_v8  ;;  %v521_v44 = vpop.f32.mrb[55].mxu0  ;;  %v713_v45 = vpop.f32.mrb[55].mxu1 }
 0x147   :  { %v522_v46 = vadd.f32 %v521_v44, %v1292_v9  ;;  %v714_v47 = vadd.f32 %v713_v45, %v1292_v9 }
 0x148   :  { %795 = vst [vmem:[%s1873_s3 + $0x1b0] sm:$0xff] %v520_v42  ;;  %859 = vst [vmem:[%s1873_s3 + $0x3b0] sm:$0xff] %v712_v43 }
 0x149   :  { %796 = vst.msk [vmem:[%s1873_s3 + $0x1b8] sm:$0xff] %vm741_vm2, %v522_v46  ;;  %860 = vst.msk [vmem:[%s1873_s3 + $0x3b8] sm:$0xff] %vm741_vm2, %v714_v47  ;;  %v525_v48 = vpop.f32.mrb[56].mxu0  ;;  %v717_v49 = vpop.f32.mrb[56].mxu1 }
 0x14a   :  { %v526_v50 = vadd.f32 %v525_v48, %v1290_v8  ;;  %v718_v51 = vadd.f32 %v717_v49, %v1290_v8  ;;  %v527_v52 = vpop.f32.mrb[57].mxu0  ;;  %v719_v53 = vpop.f32.mrb[57].mxu1 }
 0x14b   :  { %v528_v54 = vadd.f32 %v527_v52, %v1292_v9  ;;  %v720_v55 = vadd.f32 %v719_v53, %v1292_v9 }
 0x14c   :  { %797 = vst [vmem:[%s1873_s3 + $0x1c0] sm:$0xff] %v526_v50  ;;  %861 = vst [vmem:[%s1873_s3 + $0x3c0] sm:$0xff] %v718_v51 }
 0x14d   :  { %798 = vst.msk [vmem:[%s1873_s3 + $0x1c8] sm:$0xff] %vm741_vm2, %v528_v54  ;;  %862 = vst.msk [vmem:[%s1873_s3 + $0x3c8] sm:$0xff] %vm741_vm2, %v720_v55  ;;  %v531_v56 = vpop.f32.mrb[58].mxu0  ;;  %v723_v57 = vpop.f32.mrb[58].mxu1 }
 0x14e   :  { %v532_v58 = vadd.f32 %v531_v56, %v1290_v8  ;;  %v724_v59 = vadd.f32 %v723_v57, %v1290_v8  ;;  %v533_v60 = vpop.f32.mrb[59].mxu0  ;;  %v725_v61 = vpop.f32.mrb[59].mxu1 }
 0x14f   :  { %v534_v62 = vadd.f32 %v533_v60, %v1292_v9  ;;  %v726_v63 = vadd.f32 %v725_v61, %v1292_v9 }
 0x150   :  { %799 = vst [vmem:[%s1873_s3 + $0x1d0] sm:$0xff] %v532_v58  ;;  %863 = vst [vmem:[%s1873_s3 + $0x3d0] sm:$0xff] %v724_v59 }
 0x151   :  { %800 = vst.msk [vmem:[%s1873_s3 + $0x1d8] sm:$0xff] %vm741_vm2, %v534_v62  ;;  %864 = vst.msk [vmem:[%s1873_s3 + $0x3d8] sm:$0xff] %vm741_vm2, %v726_v63  ;;  %v537_v0 = vpop.f32.mrb[60].mxu0  ;;  %v729_v2 = vpop.f32.mrb[60].mxu1 }
 0x152   :  { %v538_v3 = vadd.f32 %v537_v0, %v1290_v8  ;;  %v730_v4 = vadd.f32 %v729_v2, %v1290_v8  ;;  %v539_v5 = vpop.f32.mrb[61].mxu0  ;;  %v731_v6 = vpop.f32.mrb[61].mxu1 }
 0x153   :  { %v540_v7 = vadd.f32 %v539_v5, %v1292_v9  ;;  %v732_v1 = vadd.f32 %v731_v6, %v1292_v9 }
 0x154   :  { %801 = vst [vmem:[%s1873_s3 + $0x1e0] sm:$0xff] %v538_v3  ;;  %865 = vst [vmem:[%s1873_s3 + $0x3e0] sm:$0xff] %v730_v4 }
 0x155   :  { %802 = vst.msk [vmem:[%s1873_s3 + $0x1e8] sm:$0xff] %vm741_vm2, %v540_v7  ;;  %866 = vst.msk [vmem:[%s1873_s3 + $0x3e8] sm:$0xff] %vm741_vm2, %v732_v1  ;;  %v543_v10 = vpop.f32.mrb[62].mxu0  ;;  %v735_v11 = vpop.f32.mrb[62].mxu1 }
 0x156   :  { %v544_v12 = vadd.f32 %v543_v10, %v1290_v8  ;;  %v736_v13 = vadd.f32 %v735_v11, %v1290_v8  ;;  %v545_v14 = vpop.f32.mrb[63].mxu0  ;;  %v737_v15 = vpop.f32.mrb[63].mxu1 }
 0x157   :  { %v546_v16 = vadd.f32 %v545_v14, %v1292_v9  ;;  %v738_v17 = vadd.f32 %v737_v15, %v1292_v9 }
 0x158   :  { %803 = vst [vmem:[%s1873_s3 + $0x1f0] sm:$0xff] %v544_v12  ;;  %867 = vst [vmem:[%s1873_s3 + $0x3f0] sm:$0xff] %v736_v13 }
 0x159   :  { %804 = vst.msk [vmem:[%s1873_s3 + $0x1f8] sm:$0xff] %vm741_vm2, %v546_v16  ;;  %868 = vst.msk [vmem:[%s1873_s3 + $0x3f8] sm:$0xff] %vm741_vm2, %v738_v17 }

</bundles_post_ra>
